<compile_context>
chip_gen: v7x
topology: tpu7x:2x2x1
jax: 0.10.0
libtpu: 0.0.40
codegen_flags: <defaults>
</compile_context>

<pallas_src>
import functools
import numpy as np
import jax
import jax.numpy as jnp
from jax.experimental import pallas as pl
from jax.experimental.pallas import tpu as pltpu


def _round_up(x, m):
    return (x + m - 1) // m * m


def _orbit_kernel(tok_ref, p_ref, out_ref, *, Z, sigma, table):
    """One (TILE, E) output block.

    tok_ref : (1, T)  int32    token ids for this tile (lane axis = tokens)
    p_ref   : (E, 3)  float32  packed params: [:,0]=centers, [:,1]=r*cos_mask, [:,2]=r*sin_mask
    out_ref : (T, E)  float32  embedding rows for this tile (token-major)
    """
    tok = tok_ref[...]                         # (1, T) int32
    ip = tok % Z                               # floor-mod, matches torch `%`

    if table is not None:
        # Small Z: theta_smooth -> cos/sin baked as compile-time constants (exact f32),
        # selected with a short unrolled where-chain on the lane-dense token row.
        cos_tab, sin_tab = table
        cos_r = jnp.full(ip.shape, cos_tab[0], jnp.float32)
        sin_r = jnp.full(ip.shape, sin_tab[0], jnp.float32)
        for z in range(1, Z):
            eq = ip == z
            cos_r = jnp.where(eq, cos_tab[z], cos_r)
            sin_r = jnp.where(eq, sin_tab[z], sin_r)
    else:
        ipf = ip.astype(jnp.float32)
        theta = (2.0 * np.pi / Z) * ipf + sigma * jnp.sin((4.0 * np.pi / Z) * ipf)
        cos_r = jnp.cos(theta)
        sin_r = jnp.sin(theta)

    p = p_ref[...]                             # (E, 3)
    a, rc, rs = p[:, 0:1], p[:, 1:2], p[:, 2:3]          # (E, 1) columns
    out_et = a + rc * cos_r + rs * sin_r                 # (E, T) via implicit broadcast
    out_ref[...] = out_et.T                               # XLU transpose -> (T, E) store


def single_orbit_embedding(indices, params, *, Z, sigma, out_dim=None,
                           tile_n=8192, lut_max_z=32):
    """indices: (B, S) int -> (B, S, out_dim) float32 (matches torch forward)."""
    B, S = indices.shape
    E_pad = params.shape[0]
    E = out_dim if out_dim is not None else E_pad
    N = B * S

    # --- tile / padding selection: lane-dense tokens, >= 2 grid steps when possible ---
    n128 = _round_up(max(N, 1), 128)
    if n128 <= 128:
        tile = n128
    else:
        tile = min(_round_up(tile_n, 128), _round_up(pl.cdiv(n128, 2), 128))
    n_pad = _round_up(n128, tile)
    grid = n_pad // tile

    flat = indices.reshape(-1).astype(jnp.int32)
    if n_pad != N:
        flat = jnp.pad(flat, (0, n_pad - N))
    tok = flat.reshape(1, n_pad)

    # Bake the per-class cos/sin of theta_smooth when Z is small (Z, sigma are static).
    if Z <= lut_max_z:
        zz = np.arange(Z, dtype=np.float64)
        th = 2.0 * np.pi * zz / Z + sigma * np.sin(4.0 * np.pi * zz / Z)
        table = (tuple(float(v) for v in np.cos(th)),
                 tuple(float(v) for v in np.sin(th)))
    else:
        table = None

    kernel = functools.partial(_orbit_kernel, Z=int(Z), sigma=float(sigma), table=table)
    out = pl.pallas_call(
        kernel,
        out_shape=jax.ShapeDtypeStruct((n_pad, E_pad), jnp.float32),
        grid=(grid,),
        in_specs=[
            pl.BlockSpec((1, tile), lambda i: (0, i)),     # tokens (lane-dense)
            pl.BlockSpec((E_pad, 3), lambda i: (0, 0)),    # packed params, resident
        ],
        out_specs=pl.BlockSpec((tile, E_pad), lambda i: (i, 0)),
        compiler_params=pltpu.CompilerParams(
            dimension_semantics=("parallel",),
        ),
        cost_estimate=pl.CostEstimate(
            flops=n_pad * (4 * E_pad + 16),
            transcendentals=0 if table is not None else 3 * n_pad,
            bytes_accessed=4 * n_pad * (1 + E_pad) + 12 * E_pad,
        ),
    )(tok, params)

    # (n_pad, E_pad) row-major is already token-major; drop padding, reshape (no transpose).
    return out[:N, :E].reshape(B, S, E)


# ---------------------------------------------------------------------------
# Parameter construction (mirrors SingleOrbitEmbedding.__init__) and a pure
# numpy reference mirroring the torch forward pass exactly.
# ---------------------------------------------------------------------------

def make_params(key, embed_dim):
    n_pairs = embed_dim // 2
    kx, ky = jax.random.split(key)
    R = np.full((n_pairs,), 0.5, dtype=np.float32)
    Cx = (np.asarray(jax.random.normal(kx, (n_pairs,), jnp.float32)) * 0.1).astype(np.float32)
    Cy = (np.asarray(jax.random.normal(ky, (n_pairs,), jnp.float32)) * 0.1).astype(np.float32)
    return R, Cx, Cy


def pack_params(R, Cx, Cy):
    """Pack (R, Cx, Cy) into a single (E_pad, 3) block: [a | r*cos_mask | r*sin_mask]."""
    n_pairs = R.shape[0]
    E = 2 * n_pairs
    E_pad = _round_up(E, 8)
    p = np.zeros((E_pad, 3), np.float32)
    p[0:E:2, 0] = Cx        # x rows: center
    p[1:E:2, 0] = Cy        # y rows: center
    p[0:E:2, 1] = R         # x rows get R * cos(theta)
    p[1:E:2, 2] = R         # y rows get R * sin(theta)
    return jnp.asarray(p), E


def reference_forward(indices, R, Cx, Cy, Z, sigma):
    ip = (np.asarray(indices) % Z).astype(np.float64)
    theta = 2.0 * np.pi * ip / Z + sigma * np.sin(4.0 * np.pi * ip / Z)
    coords = []
    for j in range(R.shape[0]):
        coords.append(Cx[j] + R[j] * np.cos(theta))
        coords.append(Cy[j] + R[j] * np.sin(theta))
    return np.stack(coords, axis=-1).astype(np.float32)


if __name__ == "__main__":
    Z = 10
    embed_dim = 32          # n_pairs = 16
    sigma = 0.2
    B, S = 2, 8

    key = jax.random.PRNGKey(0)
    k_tok, k_par = jax.random.split(key)
    # indices may exceed Z; the module applies % Z internally.
    indices = jax.random.randint(k_tok, (B, S), 0, 4 * Z, dtype=jnp.int32)

    R, Cx, Cy = make_params(k_par, embed_dim)
    params, out_dim = pack_params(R, Cx, Cy)

    out = single_orbit_embedding(indices, params, Z=Z, sigma=sigma, out_dim=out_dim)
    out = jax.block_until_ready(out)

    ref = reference_forward(indices, R, Cx, Cy, Z, sigma)
    np.testing.assert_allclose(np.asarray(out), ref, rtol=1e-4, atol=1e-4)
    print("KERNEL_OK")
</pallas_src>

<mosaic_0001>
module attributes {stable_mosaic.version = 11 : i64} {
  func.func @_orbit_kernel(%arg0: i32, %arg1: memref<1x128xi32, #tpu.memory_space<vmem>>, %arg2: memref<32x3xf32, #tpu.memory_space<vmem>>, %arg3: memref<128x32xf32, #tpu.memory_space<vmem>>) attributes {dimension_semantics = [#tpu.dimension_semantics<parallel>], iteration_bounds = array<i64: 1>, scalar_prefetch = 0 : i64, scratch_operands = 0 : i64, tpu.core_type = #tpu.core_type<tc>, window_params = [{transform_indices = @transform_0, window_bounds = array<i64: 1, 128>}, {pipeline_mode = #tpu.pipeline_mode<synchronous>, transform_indices = @transform_1, window_bounds = array<i64: 32, 3>}, {transform_indices = @transform_2, window_bounds = array<i64: 128, 32>}]} {
    %c0 = arith.constant 0 : index
    %c0_0 = arith.constant 0 : index
    %0 = vector.load %arg1[%c0, %c0_0] : memref<1x128xi32, #tpu.memory_space<vmem>>, vector<1x128xi32>
    %c10_i32 = arith.constant 10 : i32
    %c0_i32 = arith.constant 0 : i32
    %1 = arith.cmpi eq, %c10_i32, %c0_i32 : i32
    %c1_i32 = arith.constant 1 : i32
    %2 = arith.select %1, %c1_i32, %c10_i32 : i32
    %3 = vector.broadcast %2 : i32 to vector<1x128xi32>
    %4 = arith.remsi %0, %3 : vector<1x128xi32>
    %c0_i32_1 = arith.constant 0 : i32
    %5 = vector.broadcast %c0_i32_1 : i32 to vector<1x128xi32>
    %6 = arith.cmpi ne, %4, %5 : vector<1x128xi32>
    %c0_i32_2 = arith.constant 0 : i32
    %7 = vector.broadcast %c0_i32_2 : i32 to vector<1x128xi32>
    %8 = arith.cmpi slt, %4, %7 : vector<1x128xi32>
    %c0_i32_3 = arith.constant 0 : i32
    %9 = arith.cmpi slt, %2, %c0_i32_3 : i32
    %10 = vector.broadcast %9 : i1 to vector<1x128xi1>
    %11 = vector.broadcast %10 : vector<1x128xi1> to vector<1x128xi1>
    %12 = arith.xori %8, %11 : vector<1x128xi1>
    %13 = arith.andi %12, %6 : vector<1x128xi1>
    %14 = vector.broadcast %2 : i32 to vector<1x128xi32>
    %15 = arith.addi %4, %14 : vector<1x128xi32>
    %16 = arith.select %13, %15, %4 : vector<1x128xi1>, vector<1x128xi32>
    %cst = arith.constant 1.000000e+00 : f32
    %17 = vector.broadcast %cst : f32 to vector<1x128xf32>
    %cst_4 = arith.constant 0.000000e+00 : f32
    %18 = vector.broadcast %cst_4 : f32 to vector<1x128xf32>
    %c1_i32_5 = arith.constant 1 : i32
    %19 = vector.broadcast %c1_i32_5 : i32 to vector<1x128xi32>
    %20 = arith.cmpi eq, %16, %19 : vector<1x128xi32>
    %cst_6 = arith.constant 0.683295369 : f32
    %21 = vector.broadcast %cst_6 : f32 to vector<1x128xf32>
    %22 = arith.select %20, %21, %17 : vector<1x128xi1>, vector<1x128xf32>
    %cst_7 = arith.constant 0.730142056 : f32
    %23 = vector.broadcast %cst_7 : f32 to vector<1x128xf32>
    %24 = arith.select %20, %23, %18 : vector<1x128xi1>, vector<1x128xf32>
    %c2_i32 = arith.constant 2 : i32
    %25 = vector.broadcast %c2_i32 : i32 to vector<1x128xi32>
    %26 = arith.cmpi eq, %16, %25 : vector<1x128xi32>
    %cst_8 = arith.constant 0.19533813 : f32
    %27 = vector.broadcast %cst_8 : f32 to vector<1x128xf32>
    %28 = arith.select %26, %27, %22 : vector<1x128xi1>, vector<1x128xf32>
    %cst_9 = arith.constant 0.980735957 : f32
    %29 = vector.broadcast %cst_9 : f32 to vector<1x128xf32>
    %30 = arith.select %26, %29, %24 : vector<1x128xi1>, vector<1x128xf32>
    %c3_i32 = arith.constant 3 : i32
    %31 = vector.broadcast %c3_i32 : i32 to vector<1x128xi32>
    %32 = arith.cmpi eq, %16, %31 : vector<1x128xi32>
    %cst_10 = arith.constant -0.19533813 : f32
    %33 = vector.broadcast %cst_10 : f32 to vector<1x128xf32>
    %34 = arith.select %32, %33, %28 : vector<1x128xi1>, vector<1x128xf32>
    %cst_11 = arith.constant 0.980735957 : f32
    %35 = vector.broadcast %cst_11 : f32 to vector<1x128xf32>
    %36 = arith.select %32, %35, %30 : vector<1x128xi1>, vector<1x128xf32>
    %c4_i32 = arith.constant 4 : i32
    %37 = vector.broadcast %c4_i32 : i32 to vector<1x128xi32>
    %38 = arith.cmpi eq, %16, %37 : vector<1x128xi32>
    %cst_12 = arith.constant -0.683295369 : f32
    %39 = vector.broadcast %cst_12 : f32 to vector<1x128xf32>
    %40 = arith.select %38, %39, %34 : vector<1x128xi1>, vector<1x128xf32>
    %cst_13 = arith.constant 0.730142056 : f32
    %41 = vector.broadcast %cst_13 : f32 to vector<1x128xf32>
    %42 = arith.select %38, %41, %36 : vector<1x128xi1>, vector<1x128xf32>
    %c5_i32 = arith.constant 5 : i32
    %43 = vector.broadcast %c5_i32 : i32 to vector<1x128xi32>
    %44 = arith.cmpi eq, %16, %43 : vector<1x128xi32>
    %cst_14 = arith.constant -1.000000e+00 : f32
    %45 = vector.broadcast %cst_14 : f32 to vector<1x128xf32>
    %46 = arith.select %44, %45, %40 : vector<1x128xi1>, vector<1x128xf32>
    %cst_15 = arith.constant 1.22464685E-16 : f32
    %47 = vector.broadcast %cst_15 : f32 to vector<1x128xf32>
    %48 = arith.select %44, %47, %42 : vector<1x128xi1>, vector<1x128xf32>
    %c6_i32 = arith.constant 6 : i32
    %49 = vector.broadcast %c6_i32 : i32 to vector<1x128xi32>
    %50 = arith.cmpi eq, %16, %49 : vector<1x128xi32>
    %cst_16 = arith.constant -0.683295369 : f32
    %51 = vector.broadcast %cst_16 : f32 to vector<1x128xf32>
    %52 = arith.select %50, %51, %46 : vector<1x128xi1>, vector<1x128xf32>
    %cst_17 = arith.constant -0.730142056 : f32
    %53 = vector.broadcast %cst_17 : f32 to vector<1x128xf32>
    %54 = arith.select %50, %53, %48 : vector<1x128xi1>, vector<1x128xf32>
    %c7_i32 = arith.constant 7 : i32
    %55 = vector.broadcast %c7_i32 : i32 to vector<1x128xi32>
    %56 = arith.cmpi eq, %16, %55 : vector<1x128xi32>
    %cst_18 = arith.constant -0.19533813 : f32
    %57 = vector.broadcast %cst_18 : f32 to vector<1x128xf32>
    %58 = arith.select %56, %57, %52 : vector<1x128xi1>, vector<1x128xf32>
    %cst_19 = arith.constant -0.980735957 : f32
    %59 = vector.broadcast %cst_19 : f32 to vector<1x128xf32>
    %60 = arith.select %56, %59, %54 : vector<1x128xi1>, vector<1x128xf32>
    %c8_i32 = arith.constant 8 : i32
    %61 = vector.broadcast %c8_i32 : i32 to vector<1x128xi32>
    %62 = arith.cmpi eq, %16, %61 : vector<1x128xi32>
    %cst_20 = arith.constant 0.19533813 : f32
    %63 = vector.broadcast %cst_20 : f32 to vector<1x128xf32>
    %64 = arith.select %62, %63, %58 : vector<1x128xi1>, vector<1x128xf32>
    %cst_21 = arith.constant -0.980735957 : f32
    %65 = vector.broadcast %cst_21 : f32 to vector<1x128xf32>
    %66 = arith.select %62, %65, %60 : vector<1x128xi1>, vector<1x128xf32>
    %c9_i32 = arith.constant 9 : i32
    %67 = vector.broadcast %c9_i32 : i32 to vector<1x128xi32>
    %68 = arith.cmpi eq, %16, %67 : vector<1x128xi32>
    %cst_22 = arith.constant 0.683295369 : f32
    %69 = vector.broadcast %cst_22 : f32 to vector<1x128xf32>
    %70 = arith.select %68, %69, %64 : vector<1x128xi1>, vector<1x128xf32>
    %cst_23 = arith.constant -0.730142056 : f32
    %71 = vector.broadcast %cst_23 : f32 to vector<1x128xf32>
    %72 = arith.select %68, %71, %66 : vector<1x128xi1>, vector<1x128xf32>
    %c0_24 = arith.constant 0 : index
    %c0_25 = arith.constant 0 : index
    %73 = vector.load %arg2[%c0_24, %c0_25] : memref<32x3xf32, #tpu.memory_space<vmem>>, vector<32x3xf32>
    %74 = vector.extract_strided_slice %73 {offsets = [0, 0], sizes = [32, 1], strides = [1, 1]} : vector<32x3xf32> to vector<32x1xf32>
    %75 = vector.extract_strided_slice %73 {offsets = [0, 1], sizes = [32, 1], strides = [1, 1]} : vector<32x3xf32> to vector<32x1xf32>
    %76 = vector.extract_strided_slice %73 {offsets = [0, 2], sizes = [32, 1], strides = [1, 1]} : vector<32x3xf32> to vector<32x1xf32>
    %77 = vector.broadcast %75 : vector<32x1xf32> to vector<32x128xf32>
    %78 = vector.broadcast %70 : vector<1x128xf32> to vector<32x128xf32>
    %79 = arith.mulf %77, %78 : vector<32x128xf32>
    %80 = vector.broadcast %74 : vector<32x1xf32> to vector<32x128xf32>
    %81 = arith.addf %80, %79 : vector<32x128xf32>
    %82 = vector.broadcast %76 : vector<32x1xf32> to vector<32x128xf32>
    %83 = vector.broadcast %72 : vector<1x128xf32> to vector<32x128xf32>
    %84 = arith.mulf %82, %83 : vector<32x128xf32>
    %85 = arith.addf %81, %84 : vector<32x128xf32>
    %86 = tpu.transpose %85, [1, 0] : vector<32x128xf32> -> vector<128x32xf32>
    %c0_26 = arith.constant 0 : index
    %c0_27 = arith.constant 0 : index
    %87 = vector.load %arg3[%c0_26, %c0_27] : memref<128x32xf32, #tpu.memory_space<vmem>>, vector<128x32xf32>
    tpu.vector_store %arg3[%c0_26, %c0_27], %86 {strides = array<i32>} : memref<128x32xf32, #tpu.memory_space<vmem>>, vector<128x32xf32>,
    return
  }
  func.func @transform_0(%arg0: i32) -> (i32, i32) {
    %c0_i32 = arith.constant 0 : i32
    %c0_i32_0 = arith.constant 0 : i32
    return %c0_i32, %arg0 : i32, i32
  }
  func.func @transform_1(%arg0: i32) -> (i32, i32) {
    %c0_i32 = arith.constant 0 : i32
    %c0_i32_0 = arith.constant 0 : i32
    %c0_i32_1 = arith.constant 0 : i32
    return %c0_i32, %c0_i32_0 : i32, i32
  }
  func.func @transform_2(%arg0: i32) -> (i32, i32) {
    %c0_i32 = arith.constant 0 : i32
    %c0_i32_0 = arith.constant 0 : i32
    return %arg0, %c0_i32 : i32, i32
  }
}

</mosaic_0001>

<bundles_post_ra>
// kernel: tpu_custom_call.1
= control target key start
LH: loop header
LB: loop body
LE: loop exit
PB: predicated region body
PF: predicated region fallthrough
CT: control target
= control target key end

     0   :  { %v207_v0 = vmov 0   ;;  %v208_v1 = vmov 1   ;;  %v209_v4 = vmov 2   ;;  %v210_v19 = vmov 1.0   ;;  %s310_s1 = inlined_call_operand.vmem [shape: f32[32,3], index: 1, kind: input, shape index: {}]   ;;  %s311_s0 = inlined_call_operand.vmem [shape: s32[1,128], index: 0, kind: input, shape index: {}]   ;;  %s312_s2 = inlined_call_operand.vmem [shape: f32[128,32], index: 2, kind: output, shape index: {}]  }
   0x1   :  { %201 = vset.pattern.permute.xlu1 %v207_v0  ;;  %200 = vset.pattern.permute.xlu0 %v208_v1  ;;  %v55_v2 = vld [vmem:[%s310_s1] sm:$0xff]  ;;  %v56_v3 = vld [vmem:[%s310_s1 + $0x8] sm:$0xff]  ;;  %v57_v5 = vld [vmem:[%s310_s1 + $0x10] sm:$0xff]  ;;  %v211_v22 = vmov 0.0   ;;  %v80_v30 = vlaneseq  ;;  %vm171_vm13 = vcmask 261120  }
   0x2   :  { %90 = vperm.xlu1 %201, %v55_v2   ;;  %61 = vperm.xlu0 %200, %v55_v2   ;;  %v58_v6 = vld [vmem:[%s310_s1 + $0x18] sm:$0xff]  ;;  %v11_v7 = vld [vmem:[%s311_s0] sm:$0x1] }
   0x3   :  { %v13_v8 = vsub.s32 0, %v11_v7  ;;  %vm12_vm0 = vcmp.lt.s32.totalorder %v11_v7, 0  ;;  %v81_v34 = vshrl.u32 %v80_v30, 7 }
   0x5   :  { %v192_v9 = vmin.u32 %v13_v8, %v11_v7  ;;  %v82_v38 = vsub.s32 0, %v81_v34 }
   0x6   :  { %202 = vset.pattern.permute.xlu1 %v209_v4  ;;  %66 = vperm.xlu0 %200, %v56_v3  }
   0x7   :  { %110 = vperm.xlu1 %202, %v55_v2   ;;  %v242_v10 = vmul.u32.u64.low 3435973837, %v192_v9  ;;  %v243_v11 = vmul.u32.u64.high 3435973837, %v192_v9, %v242_v10 }
   0x9   :  { %v18_v12 = vshrl.u32 %v243_v11, 3 }
   0xa   :  { %71 = vperm.xlu0 %200, %v57_v5  }
   0xb   :  { %203 = vset.pattern.permute.xlu1 %v207_v0  ;;  %v19_v13 = vmul.u32 10, %v18_v12 }
   0xc   :  { %94 = vperm.xlu1 %203, %v56_v3  }
   0xd   :  { %v20_v14 = vsub.s32 %v192_v9, %v19_v13 }
   0xe   :  { %204 = vset.pattern.permute.xlu0 %v209_v4 }
   0xf   :  { %114 = vperm.xlu0 %204, %v56_v3   ;;  %v21_v15 = vsub.s32 0, %v20_v14 }
  0x10   :  { %205 = vset.pattern.permute.xlu1 %v208_v1 }
  0x11   :  { %76 = vperm.xlu1 %205, %v58_v6   ;;  %v22_v16 = vsel %vm12_vm0, %v21_v15, %v20_v14 }
  0x12   :  { %vm23_vm1 = vcmp.ne.s32.totalorder %v22_v16, 0  ;;  %vm24_vm2 = vcmp.lt.s32.totalorder %v22_v16, 0  ;;  %v26_v17 = vadd.s32 10, %v22_v16 }
  0x13   :  { %118 = vperm.xlu0 %204, %v57_v5   ;;  %vm25_vm3 = vmand %vm24_vm2, %vm23_vm1 }
  0x14   :  { %v27_v18 = vsel %vm25_vm3, %v26_v17, %v22_v16 }
  0x15   :  { %206 = vset.pattern.permute.xlu1 %v207_v0  ;;  %vm28_vm4 = vcmp.eq.s32.totalorder %v27_v18, 1  ;;  %vm31_vm5 = vcmp.eq.s32.totalorder %v27_v18, 2  ;;  %vm34_vm6 = vcmp.eq.s32.totalorder %v27_v18, 3  ;;  %vm37_vm7 = vcmp.eq.s32.totalorder %v27_v18, 4 }
  0x16   :  { %98 = vperm.xlu1 %206, %v57_v5   ;;  %v29_v20 = vsel %vm28_vm4, 0.68329537, %v210_v19  ;;  %v30_v23 = vsel %vm28_vm4, 0.73014206, %v211_v22  ;;  %vm40_vm8 = vcmp.eq.s32.totalorder %v27_v18, 5  ;;  %vm43_vm9 = vcmp.eq.s32.totalorder %v27_v18, 6 }
  0x17   :  { %122 = vperm.xlu0 %204, %v58_v6   ;;  %v32_v21 = vsel %vm31_vm5, 0.19533813, %v29_v20  ;;  %v33_v25 = vsel %vm31_vm5, 0.98073596, %v30_v23  ;;  %vm46_vm10 = vcmp.eq.s32.totalorder %v27_v18, 7  ;;  %vm49_vm11 = vcmp.eq.s32.totalorder %v27_v18, 8 }
  0x18   :  { %v35_v24 = vsel %vm34_vm6, -0.19533813, %v32_v21  ;;  %v36_v27 = vsel %vm34_vm6, 0.98073596, %v33_v25  ;;  %vm52_vm12 = vcmp.eq.s32.totalorder %v27_v18, 9 }
  0x19   :  { %v38_v26 = vsel %vm37_vm7, -0.68329537, %v35_v24  ;;  %v39_v29 = vsel %vm37_vm7, 0.73014206, %v36_v27 }
  0x1a   :  { %102 = vperm.xlu1 %206, %v58_v6   ;;  %v41_v28 = vsel %vm40_vm8, -1.0, %v38_v26  ;;  %v42_v32 = vsel %vm40_vm8, 1.2246469e-16, %v39_v29 }
  0x1b   :  { %v44_v31 = vsel %vm43_vm9, -0.68329537, %v41_v28  ;;  %v45_v35 = vsel %vm43_vm9, -0.73014206, %v42_v32 }
  0x1c   :  { %v47_v33 = vsel %vm46_vm10, -0.19533813, %v44_v31  ;;  %v48_v37 = vsel %vm46_vm10, -0.98073596, %v45_v35 }
  0x1d   :  { %v50_v36 = vsel %vm49_vm11, 0.19533813, %v47_v33  ;;  %v51_v40 = vsel %vm49_vm11, -0.98073596, %v48_v37 }
  0x1e   :  { %v53_v39 = vsel %vm52_vm12, 0.68329537, %v50_v36  ;;  %v54_v42 = vsel %vm52_vm12, -0.73014206, %v51_v40 }
  0x1f   :  { %v83_v41 = vrot.slane %v53_v39, %v82_v38  ;;  %v129_v46 = vrot.slane %v54_v42, %v82_v38 }
  0x81   :  { %v91_v43 = vpop.permute.xlu1 %90  ;;  %v62_v44 = vpop.permute.xlu0 %61 }
  0x82   :  { %v85_v45 = vmul.f32 %v83_v41, %v62_v44 }
  0x84   :  { %v105_v49 = vadd.f32 %v91_v43, %v85_v45 }
  0x85   :  { %v67_v47 = vpop.permute.xlu0 %66 }
  0x86   :  { %v111_v48 = vpop.permute.xlu1 %110  ;;  %v86_v54 = vmul.f32 %v83_v41, %v67_v47 }
  0x87   :  { %v131_v50 = vmul.f32 %v129_v46, %v111_v48 }
  0x89   :  { %v135_v51 = vadd.f32 %v131_v50, %v105_v49  ;;  %v72_v52 = vpop.permute.xlu0 %71 }
  0x8a   :  { %v87_v61 = vmul.f32 %v83_v41, %v72_v52 }
  0x8b   :  { %v95_v53 = vpop.permute.xlu1 %94  ;;  %139 = vxpose.xlu1.b32.start [1/4] (short) %v135_v51, 128 }
  0x8c   :  { %v106_v56 = vadd.f32 %v95_v53, %v86_v54 }
  0x8e   :  { %v115_v55 = vpop.permute.xlu0 %114 }
  0x8f   :  { %v132_v57 = vmul.f32 %v129_v46, %v115_v55 }
  0x90   :  { %v77_v58 = vpop.permute.xlu1 %76 }
  0x91   :  { %v136_v59 = vadd.f32 %v132_v57, %v106_v56  ;;  %v88_v2 = vmul.f32 %v83_v41, %v77_v58 }
  0x92   :  { %v119_v60 = vpop.permute.xlu0 %118 }
  0x93   :  { %140 = vxpose.xlu1.b32.cont [2/4] (short) %v136_v59, 128  ;;  %v133_v63 = vmul.f32 %v129_v46, %v119_v60 }
  0x95   :  { %v99_v62 = vpop.permute.xlu1 %98 }
  0x96   :  { %v107_v0 = vadd.f32 %v99_v62, %v87_v61  ;;  %v123_v1 = vpop.permute.xlu0 %122 }
  0x97   :  { %v134_v5 = vmul.f32 %v129_v46, %v123_v1 }
  0x98   :  { %v137_v3 = vadd.f32 %v133_v63, %v107_v0 }
  0x99   :  { %v103_v4 = vpop.permute.xlu1 %102 }
  0x9a   :  { %v108_v6 = vadd.f32 %v103_v4, %v88_v2  ;;  %141 = vxpose.xlu1.b32.cont [3/4] (short) %v137_v3, 128 }
  0x9c   :  { %v138_v7 = vadd.f32 %v134_v5, %v108_v6 }
  0x9e   :  { %142 = vxpose.xlu1.b32.end [4/4] (short) %v138_v7, 128 }
 0x112   :  { %v155_v8 = vpop.trf.xlu1 }
 0x113   :  { %172 = vst.msk [vmem:[%s312_s2] sm:$0xff] %vm171_vm13, %v155_v8 }
 0x116   :  { %v156_v9 = vpop.trf.xlu1 }
 0x117   :  { %173 = vst.msk [vmem:[%s312_s2 + $0x8] sm:$0xff] %vm171_vm13, %v156_v9 }
 0x11a   :  { %v157_v10 = vpop.trf.xlu1 }
 0x11b   :  { %174 = vst.msk [vmem:[%s312_s2 + $0x10] sm:$0xff] %vm171_vm13, %v157_v10 }
 0x11e   :  { %v158_v11 = vpop.trf.xlu1 }
 0x11f   :  { %175 = vst.msk [vmem:[%s312_s2 + $0x18] sm:$0xff] %vm171_vm13, %v158_v11 }
 0x122   :  { %v159_v12 = vpop.trf.xlu1 }
 0x123   :  { %176 = vst.msk [vmem:[%s312_s2 + $0x20] sm:$0xff] %vm171_vm13, %v159_v12 }
 0x126   :  { %v160_v13 = vpop.trf.xlu1 }
 0x127   :  { %177 = vst.msk [vmem:[%s312_s2 + $0x28] sm:$0xff] %vm171_vm13, %v160_v13 }
 0x12a   :  { %v161_v14 = vpop.trf.xlu1 }
 0x12b   :  { %178 = vst.msk [vmem:[%s312_s2 + $0x30] sm:$0xff] %vm171_vm13, %v161_v14 }
 0x12e   :  { %v162_v15 = vpop.trf.xlu1 }
 0x12f   :  { %179 = vst.msk [vmem:[%s312_s2 + $0x38] sm:$0xff] %vm171_vm13, %v162_v15 }
 0x132   :  { %v163_v16 = vpop.trf.xlu1 }
 0x133   :  { %180 = vst.msk [vmem:[%s312_s2 + $0x40] sm:$0xff] %vm171_vm13, %v163_v16 }
 0x136   :  { %v164_v17 = vpop.trf.xlu1 }
 0x137   :  { %181 = vst.msk [vmem:[%s312_s2 + $0x48] sm:$0xff] %vm171_vm13, %v164_v17 }
 0x13a   :  { %v165_v18 = vpop.trf.xlu1 }
 0x13b   :  { %182 = vst.msk [vmem:[%s312_s2 + $0x50] sm:$0xff] %vm171_vm13, %v165_v18 }
 0x13e   :  { %v166_v19 = vpop.trf.xlu1 }
 0x13f   :  { %183 = vst.msk [vmem:[%s312_s2 + $0x58] sm:$0xff] %vm171_vm13, %v166_v19 }
 0x142   :  { %v167_v20 = vpop.trf.xlu1 }
 0x143   :  { %184 = vst.msk [vmem:[%s312_s2 + $0x60] sm:$0xff] %vm171_vm13, %v167_v20 }
 0x146   :  { %v168_v21 = vpop.trf.xlu1 }
 0x147   :  { %185 = vst.msk [vmem:[%s312_s2 + $0x68] sm:$0xff] %vm171_vm13, %v168_v21 }
 0x14a   :  { %v169_v22 = vpop.trf.xlu1 }
 0x14b   :  { %186 = vst.msk [vmem:[%s312_s2 + $0x70] sm:$0xff] %vm171_vm13, %v169_v22 }
 0x14e   :  { %v170_v23 = vpop.trf.xlu1 }
 0x14f   :  { %187 = vst.msk [vmem:[%s312_s2 + $0x78] sm:$0xff] %vm171_vm13, %v170_v23 }

</bundles_post_ra>
